<compile_context>
chip_gen: v7x
topology: tpu7x:2x2x1
jax: 0.10.0
libtpu: 0.0.40
codegen_flags: <defaults>
</compile_context>

<pallas_src>
import math

import jax
import jax.numpy as jnp
from jax.experimental import pallas as pl
from jax.experimental.pallas import tpu as pltpu


def create_position_encoding(d_model: int, max_shape=(256, 256), temp_bug_fix: bool = True):
    """Replicates PositionEncodingSine._create_position_encoding (buffer setup, plain JAX)."""
    H, W = max_shape
    ones = jnp.ones((H, W), dtype=jnp.float32)
    y_position = jnp.cumsum(ones, axis=0)[None]  # (1, H, W)
    x_position = jnp.cumsum(ones, axis=1)[None]  # (1, H, W)
    idx = jnp.arange(0, d_model // 2, 2, dtype=jnp.float32)
    if temp_bug_fix:
        div_term = jnp.exp(idx * (-math.log(10000.0) / (d_model // 2)))
    else:
        # original buggy impl: (-log(10000)/d_model) // 2
        div_term = jnp.exp(idx * (-math.log(10000.0) / d_model // 2))
    div_term = div_term[:, None, None]  # (d_model//4, 1, 1)

    pe = jnp.zeros((d_model, H, W), dtype=jnp.float32)
    pe = pe.at[0::4, :, :].set(jnp.sin(x_position * div_term))
    pe = pe.at[1::4, :, :].set(jnp.cos(x_position * div_term))
    pe = pe.at[2::4, :, :].set(jnp.sin(y_position * div_term))
    pe = pe.at[3::4, :, :].set(jnp.cos(y_position * div_term))
    return pe[None]  # (1, d_model, H, W)


def _pe_add_kernel(x_ref, pe_ref, o_ref):
    # Elementwise add; the pe block is broadcast over the batch grid axis
    # because its index_map ignores the batch index.
    o_ref[...] = x_ref[...] + pe_ref[...]


def _choose_tiles(C: int, HW: int, itemsize: int, max_block_bytes: int = 2 * 1024 * 1024):
    """Pick (TM, TN) for blocks of shape (1, TM, TN) over a [*, C, H*W] slab.

    TN: largest multiple of 128 that divides HW (lane-dense stores); else full HW.
    TM: multiple-of-8 divisor of C keeping one block under max_block_bytes;
        else full C (full-dim blocks are always legal).
    """
    tn = HW
    for cand in (2048, 1024, 512, 256, 128):
        if HW % cand == 0:
            tn = cand
            break

    divs = [m for m in range(8, C + 1, 8) if C % m == 0]
    if not divs:
        tm = C  # no multiple-of-8 divisor; full-dim block along C is still legal.
    else:
        fitting = [m for m in divs if m * tn * itemsize <= max_block_bytes]
        tm = max(fitting) if fitting else min(divs)
    return tm, tn


def position_encoding_sine_forward(x, pe_flat):
    """x: [N, C, H, W]; pe_flat: [1, C, H*W] already cropped + cast to x.dtype."""
    N, C, H, W = x.shape
    HW = H * W
    itemsize = jnp.dtype(x.dtype).itemsize

    x2 = x.reshape(N, C, HW)  # contiguous NCHW -> free reshape
    tm, tn = _choose_tiles(C, HW, itemsize)
    grid = (N, C // tm, HW // tn)

    bytes_accessed = (2 * N * C * HW + C * HW) * itemsize  # x read + out write + pe read

    out = pl.pallas_call(
        _pe_add_kernel,
        out_shape=jax.ShapeDtypeStruct((N, C, HW), x.dtype),
        grid=grid,
        in_specs=[
            pl.BlockSpec((1, tm, tn), lambda n, ci, hi: (n, ci, hi)),  # x tile
            pl.BlockSpec((1, tm, tn), lambda n, ci, hi: (0, ci, hi)),  # pe reused across batch
        ],
        out_specs=pl.BlockSpec((1, tm, tn), lambda n, ci, hi: (n, ci, hi)),
        compiler_params=pltpu.CompilerParams(
            dimension_semantics=("parallel", "parallel", "parallel"),
            vmem_limit_bytes=32 * 1024 * 1024,
        ),
        cost_estimate=pl.CostEstimate(
            flops=N * C * HW,
            transcendentals=0,
            bytes_accessed=bytes_accessed,
        ),
    )(x2, pe_flat)
    return out.reshape(N, C, H, W)


class PositionEncodingSinePallas:
    def __init__(self, d_model: int, max_shape=(256, 256), temp_bug_fix: bool = True):
        self.d_model = d_model
        self.temp_bug_fix = temp_bug_fix
        self.max_shape = tuple(max_shape)
        # Registered buffer equivalent (f32, full max_shape), built once.
        self.pe = create_position_encoding(d_model, self.max_shape, temp_bug_fix)
        # Cache of cropped + cast + flattened PE, keyed by (H, W, dtype).
        self._crop_cache = {}

    def _cropped_pe(self, H: int, W: int, dtype):
        key = (H, W, jnp.dtype(dtype).name)
        pe_flat = self._crop_cache.get(key)
        if pe_flat is None:
            pe_flat = (
                self.pe[:, :, :H, :W].astype(dtype).reshape(1, self.d_model, H * W)
            )
            pe_flat = jax.block_until_ready(pe_flat)  # materialize once, reuse every call
            self._crop_cache[key] = pe_flat
        return pe_flat

    def __call__(self, x):
        # Mirror the dynamic-resize behavior of the PyTorch forward.
        # NOTE: mutating Python state here is inherent to the PyTorch semantics;
        # do not jit this wrapper across shape changes.
        N, C, H, W = x.shape
        if H > self.pe.shape[2] or W > self.pe.shape[3]:
            self.max_shape = (max(H, self.pe.shape[2]), max(W, self.pe.shape[3]))
            self.pe = create_position_encoding(self.d_model, self.max_shape, self.temp_bug_fix)
            self._crop_cache.clear()
        pe_flat = self._cropped_pe(H, W, x.dtype)
        return position_encoding_sine_forward(x, pe_flat)


if __name__ == "__main__":
    # Small deterministic example: N=2, C=d_model=8 (divisible by 4), H=W=16.
    d_model = 8
    max_shape = (32, 32)
    key = jax.random.PRNGKey(0)
    x = jax.random.normal(key, (2, d_model, 16, 16), dtype=jnp.float32)

    module = PositionEncodingSinePallas(d_model, max_shape=max_shape, temp_bug_fix=True)
    out = module(x)
    out = jax.block_until_ready(out)

    # Pure-JAX reference check.
    ref = x + module.pe[:, :, : x.shape[2], : x.shape[3]].astype(x.dtype)
    assert out.shape == x.shape and out.dtype == x.dtype
    assert jnp.allclose(out, ref, atol=1e-6, rtol=1e-6)

    # Second call exercises the cached-PE fast path (no re-slice / re-cast).
    out2 = jax.block_until_ready(module(x))
    assert jnp.allclose(out2, ref, atol=1e-6, rtol=1e-6)

    print("KERNEL_OK")
</pallas_src>

<mosaic_0001>
module attributes {stable_mosaic.version = 11 : i64} {
  func.func @_pe_add_kernel(%arg0: i32, %arg1: i32, %arg2: i32, %arg3: memref<1x8x256xf32, #tpu.memory_space<vmem>>, %arg4: memref<1x8x256xf32, #tpu.memory_space<vmem>>, %arg5: memref<1x8x256xf32, #tpu.memory_space<vmem>>) attributes {dimension_semantics = [#tpu.dimension_semantics<parallel>, #tpu.dimension_semantics<parallel>, #tpu.dimension_semantics<parallel>], iteration_bounds = array<i64: 2, 1, 1>, scalar_prefetch = 0 : i64, scratch_operands = 0 : i64, tpu.core_type = #tpu.core_type<tc>, window_params = [{transform_indices = @transform_0, window_bounds = array<i64: 1, 8, 256>}, {transform_indices = @transform_1, window_bounds = array<i64: 1, 8, 256>}, {transform_indices = @transform_2, window_bounds = array<i64: 1, 8, 256>}]} {
    %c0 = arith.constant 0 : index
    %c0_0 = arith.constant 0 : index
    %c0_1 = arith.constant 0 : index
    %0 = vector.load %arg3[%c0, %c0_0, %c0_1] : memref<1x8x256xf32, #tpu.memory_space<vmem>>, vector<1x8x256xf32>
    %c0_2 = arith.constant 0 : index
    %c0_3 = arith.constant 0 : index
    %c0_4 = arith.constant 0 : index
    %1 = vector.load %arg4[%c0_2, %c0_3, %c0_4] : memref<1x8x256xf32, #tpu.memory_space<vmem>>, vector<1x8x256xf32>
    %2 = arith.addf %0, %1 : vector<1x8x256xf32>
    %c0_5 = arith.constant 0 : index
    %c0_6 = arith.constant 0 : index
    %c0_7 = arith.constant 0 : index
    %3 = vector.load %arg5[%c0_5, %c0_6, %c0_7] : memref<1x8x256xf32, #tpu.memory_space<vmem>>, vector<1x8x256xf32>
    tpu.vector_store %arg5[%c0_5, %c0_6, %c0_7], %2 {strides = array<i32>} : memref<1x8x256xf32, #tpu.memory_space<vmem>>, vector<1x8x256xf32>,
    return
  }
  func.func @transform_0(%arg0: i32, %arg1: i32, %arg2: i32) -> (i32, i32, i32) {
    %c0_i32 = arith.constant 0 : i32
    return %arg0, %arg1, %arg2 : i32, i32, i32
  }
  func.func @transform_1(%arg0: i32, %arg1: i32, %arg2: i32) -> (i32, i32, i32) {
    %c0_i32 = arith.constant 0 : i32
    %c0_i32_0 = arith.constant 0 : i32
    return %c0_i32, %arg1, %arg2 : i32, i32, i32
  }
  func.func @transform_2(%arg0: i32, %arg1: i32, %arg2: i32) -> (i32, i32, i32) {
    %c0_i32 = arith.constant 0 : i32
    return %arg0, %arg1, %arg2 : i32, i32, i32
  }
}

</mosaic_0001>

<bundles_post_ra>
// kernel: tpu_custom_call.1
= control target key start
LH: loop header
LB: loop body
LE: loop exit
PB: predicated region body
PF: predicated region fallthrough
CT: control target
= control target key end

     0   :  { %7 = vsyncpa [#allocation3], 0  ;;  %s824_s0 = inlined_call_operand.hbm [shape: f32[2,8,256], index: 0, kind: input, shape index: {}]   ;;  %s825_s1 = inlined_call_operand.hbm [shape: f32[1,8,256], index: 1, kind: input, shape index: {}]   ;;  %s826_s2 = inlined_call_operand.hbm [shape: f32[2,8,256], index: 2, kind: output, shape index: {}]  }
   0x1   :  { %9 = vsyncpa [#allocation3 + $0x1], 0 }
   0x2   :  { %10 = vsyncpa [#allocation6], 0 }
   0x3   :  { %11 = vsyncpa [#allocation4], 0 }
   0x4   :  { %13 = vsyncpa [#allocation4 + $0x1], 0  ;;  %s608_s9 = smov 0   ;;  %s610_s10 = smov 0  }
   0x5   :  { %s612_s11 = smov 0   ;;  %s614_s12 = smov 0  }
   0x6   :  { %s616_s13 = smov 0   ;;  %s618_s14 = smov 0  }
   0x7 LB: > { %s352_s15 = sadd.s32 4294967295, %s588_s14   ;;  %s353_s16 = sadd.s32 4294967294, %s588_s14   ;;  %s588_s14 = sphi %s618_s14, %s19_s14   ;;  %s584_s13 = sphi %s616_s13, %s851_s13   ;;  %s580_s12 = sphi %s614_s12, %s850_s12   ;;  %s576_s11 = sphi %s612_s11, %s849_s11   ;;  %s572_s10 = sphi %s610_s10, %s848_s10   ;;  %s568_s9 = sphi %s608_s9, %s847_s9  }
   0x8   : > { %p62_p0 = scmp.ne.s32.totalorder %s572_s10, %s568_s9  ;;  %p642_p1 = scmp.eq.s32.totalorder %s352_s15, 0 }
   0x9   : > { %p646_p2 = scmp.eq.s32.totalorder %s352_s15, 1  ;;  %p124_p3 = scmp.eq.s32.totalorder %s353_s16, 1 }
   0xa   : > { %s831_s17 = scalar_select %p642_p1, 1, 0 }
   0xb   : > { %s832_s18 = scalar_select %p646_p2, 1, 0 }
   0xc   : > { %p652_p4 = por %p642_p1, %p62_p0  ;;  %p354_p5 = scmp.ge.s32.totalorder %s588_s14, 1 }
   0xd   : > { %p657_p6 = por %p124_p3, %p62_p0  ;;  %p131_p7 = scmp.lt.s32.totalorder %s588_s14, 3 }
   0xe   : > { %s833_s19 = scalar_select %p652_p4, 1, 0 }
   0xf   : > { %s834_s20 = scalar_select %p657_p6, 1, 0 }
  0x10   : > { %p662_p8 = pnand %p354_p5, %p131_p7  ;;  %s590_s22 = smov [#allocation5]  }
  0x11   : > { %s149_s23 = sshll.u32 %s590_s22, 4  ;;  %s38_s25 = sadd.s32 1, %s584_s13  ;;  %s150_s23 = int_to_ptr.vmem [resolvable:$true] %s149_s23 }
  0x12   : > { %s835_s21 = scalar_select %p662_p8, 1, 0 }
  0x13   : > { %p379_p10 = pneg %p662_p8  ;;  %s49_s26 = sadd.s32 1, %s576_s11 }
  0x14   : > { %p677_p12 = scmp.ge.s32.totalorder %s38_s25, 2  ;;  %s444_s30 = scalar_lea.hbm %s825_s1, 256 }
  0x15   : > { %p671_p11 = pnand %p379_p10, %p642_p1  ;;  %p445_p13 = scmp.ne.s32.totalorder %s825_s1, %s444_s30 }
  0x16   : > { %s837_s27 = scalar_select %p677_p12, 1, 0 }
  0x17   : > { %p446_p0 = pneg %p671_p11  ;;  %p451_p7 = scmp.lt.u32.totalorder %s444_s30, %s825_s1 }
  0x19   : > { %p447_p3 = pnand %p446_p0, %p445_p13 }
  0x1b   : > { %p448_p5 = pneg %p447_p3 }
  0x1d   : > { %p453_p10 = pnand %p451_p7, %p448_p5 }
  0x1f   : > { %456 = shalt.err (!%p453_p10)
}
  0x20   : > { %s457_s7 = scalar_lea.vmem %s150_s23, 256  ;;  %p465_p4 = scmp.lt.s32.totalorder %s150_s23, %s150_s23 }
  0x21   : > { %p458_p9 = scmp.ne.s32.totalorder %s150_s23, %s457_s7  ;;  %p466_p8 = scmp.lt.s32.totalorder %s457_s7, %s457_s7 }
  0x23   : > { %p460_p6 = pnand %p458_p9, %p446_p0  ;;  %p467_p2 = por %p466_p8, %p465_p4 }
  0x25   : > { %p461_p1 = pneg %p460_p6 }
  0x27   : > { %p468_p12 = pnand %p467_p2, %p461_p1 }
  0x29   : > { %471 = shalt.err (!%p468_p12)
}
  0x2a   : > { %382 = dma.hbm_to_vmem [thread:$0]  (!%p671_p11), %s825_s1, 256, %s150_s23, [#allocation6]  }
  0x2b   : > { %p838_p4 = scmp.ne.s32.totalorder %s837_s27, 0  ;;  %p56_p1 = scmp.ne.s32.totalorder %s576_s11, %s572_s10 }
  0x2c   : > { %p57_p2 = scmp.eq.s32.totalorder %s588_s14, 0  ;;  %p392_p6 = scmp.lt.s32.totalorder %s588_s14, 2 }
  0x2d   : > { %s853_s25 = smov (%p838_p4, %s38_s25), 0  ;;  %p839_p12 = scmp.ne.s32.totalorder %s832_s18, 0 }
  0x2e   : > { %s42_s16 = ssub.s32 %s584_s13, %s853_s25  ;;  %p58_p9 = por %p57_p2, %p56_p1 }
  0x2f   : > { %p47_p8 = scmp.eq.s32.totalorder %s42_s16, 0  ;;  %p709_p13 = por %p839_p12, %p56_p1 }
  0x30   : > { %s160_s24 = sand.u32 1, %s576_s11   ;;  %s369_s27 = sshll.u32 %s584_s13, 8 }
  0x31   : > { %s717_s28 = scalar_select %p47_p8, %s576_s11, %s49_s26  }
  0x32   : > { %s357_s23 = sshll.u32 %s160_s24, 4  ;;  %s723_s3 = scalar_lea.hbm %s824_s0, %s369_s27 }
  0x33   : > { %s164_s18 = scalar_lea.vmem [#allocation2], %s357_s23  ;;  %p727_p11 = pnand %p392_p6, %p58_p9 }
  0x34   : > { %s176_s4 = sshll.u32 %s164_s18, 4  ;;  %s161_s26 = scalar_lea.sflag [#allocation3], %s160_s24  ;;  %s725_s4 = int_to_ptr.vmem [resolvable:$true] %s176_s4 }
  0x35   : > { %s472_s6 = scalar_lea.hbm %s723_s3, 256  ;;  %p474_p3 = pneg %p727_p11 }
  0x36   : > { %p473_p0 = scmp.ne.s32.totalorder %s723_s3, %s472_s6  ;;  %s477_s15 = scalar_lea.hbm %s824_s0, 512 }
  0x37   : > { %p478_p10 = scmp.lt.u32.totalorder %s723_s3, %s824_s0  ;;  %p479_p4 = scmp.lt.u32.totalorder %s477_s15, %s472_s6 }
  0x38   : > { %p475_p5 = pnand %p474_p3, %p473_p0  ;;  %p481_p2 = scmp.lt.u32.totalorder %s472_s6, %s723_s3 }
  0x39   : > { %p480_p1 = por %p479_p4, %p478_p10 }
  0x3a   : > { %p476_p7 = pneg %p475_p5 }
  0x3b   : > { %p482_p6 = por %p481_p2, %p480_p1 }
  0x3d   : > { %p483_p8 = pnand %p482_p6, %p476_p7 }
  0x3f   : > { %486 = shalt.err (!%p483_p8)
}
  0x40   : > { %s487_s24 = scalar_lea.vmem %s725_s4, 256  ;;  %s591_s27 = smov [#allocation2]  }
  0x41   : > { %p488_p9 = scmp.ne.s32.totalorder %s725_s4, %s487_s24  ;;  %s492_s29 = sshll.u32 %s591_s27, 4  ;;  %s493_s29 = int_to_ptr.vmem [resolvable:$false] %s492_s29 }
  0x42   : > { %s494_s30 = scalar_lea.vmem %s493_s29, 512  ;;  %p495_p5 = scmp.lt.s32.totalorder %s725_s4, %s493_s29 }
  0x43   : > { %p490_p12 = pnand %p488_p9, %p474_p3  ;;  %p496_p10 = scmp.lt.s32.totalorder %s494_s30, %s487_s24 }
  0x45   : > { %p491_p0 = pneg %p490_p12  ;;  %p497_p4 = por %p496_p10, %p495_p5 }
  0x47   : > { %p498_p1 = pnand %p497_p4, %p491_p0 }
  0x49   : > { %501 = shalt.err (!%p498_p1)
}
  0x4a   : > { %386 = dma.hbm_to_vmem [thread:$0]  (!%p727_p11), %s723_s3, 256, %s725_s4, %s161_s26  }
  0x4b   : > { %p842_p7 = scmp.ne.s32.totalorder %s835_s21, 0 }
  0x4c   : > { %s759_s18 = sand.u32 (!%p842_p7), 1, %s572_s10   ;;  %p843_p3 = scmp.ne.s32.totalorder (!%p842_p7), %s833_s19, 0 }
  0x4d   : > { %185 = sbr.rel (%p842_p7) target bundleno = 113 (0x71), region = 28  ;;  %s361_s6 = sshll.u32 (!%p842_p7), %s759_s18, 4 }
  0x4e   : > { %s188_s7 = scalar_lea.sflag (!%p842_p7), [#allocation3], %s759_s18  ;;  %s191_s8 = scalar_lea.vmem (!%p842_p7), [#allocation2], %s361_s6 }
  0x54   : > { %555 = dma.done.wait (%p843_p3), %s188_s7, 256  }
  0x55   : > { %557 = vsyncadd (%p843_p3), %s188_s7, 4294967040  ;;  %p844_p2 = scmp.ne.s32.totalorder %s831_s17, 0 }
  0x57   : > { %559 = dma.done.wait (%p844_p2), [#allocation6], 256  }
  0x58   : > { %561 = vsyncadd (%p844_p2), [#allocation6], 4294967040  ;;  %s215_s21 = scalar_lea.vmem [#allocation7], %s361_s6  ;;  %s370_s4 = sshll.u32 %s580_s12, 8  ;;  %v219_v0 = vld [vmem:[%s191_s8] sm:$0xff]  ;;  %v220_v2 = vld [vmem:[%s191_s8 + $0x8] sm:$0xff] }
  0x59   : > { %s246_s3 = sshll.u32 %s215_s21, 4  ;;  %v221_v1 = vld [vmem:[#allocation5] sm:$0xff]  ;;  %v222_v4 = vld [vmem:[#allocation5 + $0x8] sm:$0xff]  ;;  %s777_s5 = scalar_lea.hbm %s826_s2, %s370_s4  ;;  %s772_s3 = int_to_ptr.vmem [resolvable:$true] %s246_s3 }
  0x5a   : > { %v223_v3 = vadd.f32 %v221_v1, %v219_v0  ;;  %v224_v5 = vadd.f32 %v222_v4, %v220_v2  ;;  %s228_s26 = scalar_lea.sflag [#allocation4], %s759_s18  ;;  %s502_s12 = scalar_lea.vmem %s772_s3, 256 }
  0x5b   : > { %p503_p11 = scmp.ne.s32.totalorder %s772_s3, %s502_s12  ;;  %s592_s15 = smov [#allocation7]  }
  0x5c   : > { %225 = vst [vmem:[%s215_s21] sm:$0xff] %v223_v3  ;;  %226 = vst [vmem:[%s215_s21 + $0x8] sm:$0xff] %v224_v5  ;;  %s506_s16 = sshll.u32 %s592_s15, 4  ;;  %s507_s16 = int_to_ptr.vmem [resolvable:$false] %s506_s16 }
  0x5d   : > { %p504_p6 = pnand %p503_p11, %p709_p13  ;;  %s508_s23 = scalar_lea.vmem %s507_s16, 512 }
  0x5e   : > { %p509_p9 = scmp.lt.s32.totalorder %s772_s3, %s507_s16  ;;  %p510_p12 = scmp.lt.s32.totalorder %s508_s23, %s502_s12 }
  0x5f   : > { %p505_p8 = pneg %p504_p6 }
  0x60   : > { %p511_p0 = por %p510_p12, %p509_p9 }
  0x62   : > { %p512_p5 = pnand %p511_p0, %p505_p8 }
  0x64   : > { %515 = shalt.err (!%p512_p5)
}
  0x65   : > { %s516_s24 = scalar_lea.hbm %s777_s5, 256  ;;  %s520_s30 = scalar_lea.hbm %s826_s2, 512 }
  0x66   : > { %p517_p10 = scmp.ne.s32.totalorder %s777_s5, %s516_s24  ;;  %p521_p7 = scmp.lt.u32.totalorder %s777_s5, %s826_s2 }
  0x67   : > { %p522_p3 = scmp.lt.u32.totalorder %s520_s30, %s516_s24  ;;  %p524_p11 = scmp.lt.u32.totalorder %s516_s24, %s777_s5 }
  0x68   : > { %p518_p4 = pnand %p517_p10, %p709_p13 }
  0x69   : > { %p523_p2 = por %p522_p3, %p521_p7 }
  0x6a   : > { %p519_p1 = pneg %p518_p4 }
  0x6b   : > { %p525_p6 = por %p524_p11, %p523_p2 }
  0x6d   : > { %p526_p8 = pnand %p525_p6, %p519_p1 }
  0x6f   : > { %529 = shalt.err (!%p526_p8)
}
  0x70   : > { %377 = dma.vmem_to_hbm [thread:$0]  (%p709_p13), %s772_s3, 256, %s777_s5, %s228_s26  }
  0x71 PF: > { %s258_s7 = sand.u32 1, %s568_s9   ;;  %p845_p9 = scmp.ne.s32.totalorder %s834_s20, 0 }
  0x72   : > { %p846_p12 = scmp.ge.s32.totalorder %s588_s14, 2  ;;  %s259_s8 = scalar_lea.sflag [#allocation4], %s258_s7 }
  0x74   : > { %p388_p0 = pnand %p846_p12, %p845_p9 }
  0x76   : > { %563 = dma.done.wait (!%p388_p0), %s259_s8, 256  }
  0x77   : > { %565 = vsyncadd (!%p388_p0), %s259_s8, 4294967040  ;;  %s19_s14 = sadd.s32 1, %s588_s14   ;;  %s847_s9 = smov %s572_s10 }
  0x78   : > { %p16_p5 = scmp.ge.s32.totalorder %s19_s14, 4   ;;  %s848_s10 = smov %s576_s11 }
  0x79   : > { %s849_s11 = smov %s717_s28  ;;  %s850_s12 = smov %s584_s13 }
  0x7a   : > { %s851_s13 = smov %s853_s25  ;;  %18 = sbr.rel (!%p16_p5) target bundleno = 7 (0x7), region = 78 }
  0x81   :  { %264 = vsyncpa [#allocation3], 1 }
  0x82   :  { %266 = vsyncpa [#allocation3 + $0x1], 1 }
  0x83   :  { %267 = vsyncpa [#allocation6], 1 }
  0x84   :  { %268 = vsyncpa [#allocation4], 1 }
  0x85   :  { %270 = vsyncpa [#allocation4 + $0x1], 1 }

</bundles_post_ra>
